<compile_context>
chip_gen: v5e
topology: v5e:2x2
jax: 0.10.0
libtpu: 0.0.40
codegen_flags: <defaults>
</compile_context>

<pallas_src>
import functools

import jax
import jax.numpy as jnp
import numpy as np
from jax import lax
from jax.experimental import pallas as pl
from jax.experimental.pallas import tpu as pltpu

_HIGHEST = lax.Precision.HIGHEST


def _cluster_loss_kernel(x_ref, m_ref, loss_ref, mean_acc, cnt_acc, l1_acc, *,
                         num_groups, num_multi_rows, has_multi):
    p = pl.program_id(0)            # phase: 0 = accumulate group sums, 1 = loss_1
    t = pl.program_id(1)            # row-tile index
    last_p = pl.num_programs(0) - 1
    last_t = pl.num_programs(1) - 1

    @pl.when(jnp.logical_and(p == 0, t == 0))
    def _init():
        mean_acc[...] = jnp.zeros_like(mean_acc)
        cnt_acc[...] = jnp.zeros_like(cnt_acc)
        l1_acc[...] = jnp.zeros_like(l1_acc)

    x = x_ref[...].astype(jnp.float32)     # (TN, Dp); bf16 inputs also fine
    m = m_ref[...]                          # (G, TN) one-hot membership (f32)

    @pl.when(p == 0)
    def _accumulate():
        # Partial group sums (G, Dp) and member counts (G, 1) for this tile.
        mean_acc[...] += lax.dot_general(
            m, x, (((1,), (0,)), ((), ())),
            precision=_HIGHEST, preferred_element_type=jnp.float32)
        cnt_acc[...] += jnp.sum(m, axis=1, keepdims=True)

    if has_multi:
        @pl.when(jnp.logical_and(p == 1, t == 0))
        def _to_means():
            # Convert accumulated group sums -> group means exactly once.
            mean_acc[...] = mean_acc[...] / cnt_acc[...]

        @pl.when(p == 1)
        def _loss1():
            # Each row's own group mean, selected via the one-hot membership
            # (contract over the G=8 axis).  fp32 precision keeps the diff for
            # singleton-group rows and zero-padded rows exactly zero, so no
            # mask is needed.
            mean_expand = lax.dot_general(
                m, mean_acc[...], (((0,), (0,)), ((), ())),
                precision=_HIGHEST, preferred_element_type=jnp.float32)
            diff = x - mean_expand
            sq_row = jnp.sum(diff * diff, axis=1, keepdims=True)          # (TN, 1)
            l1_acc[...] += jnp.sum(jnp.sqrt(sq_row), axis=(0, 1), keepdims=True)

    @pl.when(jnp.logical_and(p == last_p, t == last_t))
    def _finalize():
        g = num_groups
        means = mean_acc[...]
        if not has_multi:                       # sums were never converted
            means = means / cnt_acc[...]

        gram = lax.dot_general(means, means, (((1,), (1,)), ((), ())),
                               precision=_HIGHEST,
                               preferred_element_type=jnp.float32)        # (G, G)
        rids = lax.broadcasted_iota(jnp.int32, (g, g), 0)
        cids = lax.broadcasted_iota(jnp.int32, (g, g), 1)
        eye = rids == cids
        diag = jnp.where(eye, gram, 0.0)
        sq_col = jnp.sum(diag, axis=1, keepdims=True)                     # (G, 1)
        sq_row = jnp.sum(diag, axis=0, keepdims=True)                     # (1, G)
        dist2 = sq_col + sq_row - 2.0 * gram
        dist = jnp.minimum(jnp.sqrt(jnp.maximum(dist2, 1e-12)), 1.0)
        ref_m = jnp.where(eye, 0.0, 1.0).astype(jnp.float32)              # 1 - I
        d = dist - ref_m
        row_sq = jnp.sum(d * d, axis=1, keepdims=True)                    # (G, 1)
        loss2 = jnp.sum(jnp.sqrt(row_sq), axis=(0, 1), keepdims=True) / g  # (1, 1)

        if has_multi:
            loss = l1_acc[...] / num_multi_rows + loss2
        else:
            loss = loss2
        loss_ref[...] = loss


def cluster_loss_pallas(x_clusters, cluster_num_list, *, interpret=False):
    """Pallas equivalent of ClusterLoss().forward(x_clusters, cluster_num_list)."""
    cluster_num_list = [int(c) for c in cluster_num_list]
    num_groups = len(cluster_num_list)
    assert num_groups == 8, "ClusterLoss hard-codes an 8x8 mean-distance matrix"
    assert all(c >= 1 for c in cluster_num_list)
    n_rows, feat = x_clusters.shape
    assert sum(cluster_num_list) == n_rows

    num_multi_rows = sum(c for c in cluster_num_list if c > 1)
    has_multi = num_multi_rows > 0

    # ---- static layout decisions -------------------------------------------
    d_pad = max(128, ((feat + 127) // 128) * 128)   # lane-align the feature dim

    # Row-tile size: keep double-buffered x tiles comfortably inside the scoped
    # VMEM limits (16 MiB default on v5e, 32 MiB on v6e, 64 MiB physical v7x).
    bytes_per_row = d_pad * 4
    tile_n = 1024
    while tile_n > 128 and 4 * tile_n * bytes_per_row > 8 * 2**20:
        tile_n //= 2
    if n_rows <= tile_n:
        tile_n = n_rows          # single full-extent block (any N is legal)
        num_tiles = 1
        n_pad = n_rows
    else:
        num_tiles = -(-n_rows // tile_n)
        n_pad = num_tiles * tile_n

    # Zero-padded x (zero rows belong to no group, zero columns change no
    # distance) and the (G, N) one-hot membership matrix.
    x_pad = jnp.pad(x_clusters, ((0, n_pad - n_rows), (0, d_pad - feat)))
    member = np.zeros((num_groups, n_pad), np.float32)
    ptr = 0
    for i, c in enumerate(cluster_num_list):
        member[i, ptr:ptr + c] = 1.0
        ptr += c

    n_phases = 2 if has_multi else 1        # skip the loss_1 pass entirely if unused
    kernel = functools.partial(
        _cluster_loss_kernel,
        num_groups=num_groups,
        num_multi_rows=max(num_multi_rows, 1),
        has_multi=has_multi,
    )

    out = pl.pallas_call(
        kernel,
        out_shape=jax.ShapeDtypeStruct((1, 1), jnp.float32),
        grid=(n_phases, num_tiles),
        in_specs=[
            pl.BlockSpec((tile_n, d_pad), lambda p, t: (t, 0)),       # x row-tiles
            pl.BlockSpec((num_groups, tile_n), lambda p, t: (0, t)),  # membership
        ],
        out_specs=pl.BlockSpec((1, 1), lambda p, t: (0, 0)),
        scratch_shapes=[
            pltpu.VMEM((num_groups, d_pad), jnp.float32),   # group sums / means
            pltpu.VMEM((num_groups, 1), jnp.float32),        # member counts
            pltpu.VMEM((1, 1), jnp.float32),                 # loss_1 partial sum
        ],
        compiler_params=pltpu.CompilerParams(
            dimension_semantics=("arbitrary", "arbitrary")),
        interpret=interpret,
    )(x_pad, jnp.asarray(member))
    return out[0, 0]


def _reference_jax(x, cluster_num_list):
    """Pure-JAX mirror of the PyTorch forward (fp32 matmul, like CUDA f32)."""
    x = x.astype(jnp.float32)
    means, cal, expand = [], [], []
    ptr = 0
    for c in cluster_num_list:
        if c == 1:
            means.append(x[ptr])
        else:
            mu = jnp.mean(x[ptr:ptr + c], axis=0)
            means.append(mu)
            cal.append(x[ptr:ptr + c])
            expand.append(jnp.tile(mu[None, :], (c, 1)))
        ptr += c
    means = jnp.stack(means)
    g = len(cluster_num_list)

    sq = jnp.sum(means ** 2, axis=1, keepdims=True)
    gram = jnp.dot(means, means.T, precision=lax.Precision.HIGHEST)
    d2 = sq + sq.T - 2.0 * gram
    d2 = jnp.minimum(jnp.sqrt(jnp.clip(d2, 1e-12, None)), 1.0)
    ref_m = jnp.ones((g, g), jnp.float32) - jnp.eye(g, dtype=jnp.float32)
    loss_2 = jnp.mean(jnp.sqrt(jnp.sum((d2 - ref_m) ** 2, axis=1)))

    if cal:
        calc = jnp.concatenate(cal, axis=0)
        exp = jnp.concatenate(expand, axis=0)
        dist = jnp.sqrt(jnp.sum((calc - exp) ** 2, axis=1))
        return jnp.mean(dist) + loss_2
    return loss_2


if __name__ == "__main__":
    # 8 groups (the module hard-codes the 8x8 mean-distance matrix), N = 16.
    cluster_num_list = [2, 1, 3, 2, 1, 4, 2, 1]
    feat_dim = 32
    n_total = sum(cluster_num_list)

    key = jax.random.PRNGKey(0)
    # Scale ~0.1 so pairwise mean distances straddle the clamp(max=1.0) branch.
    x = 0.1 * jax.random.normal(key, (n_total, feat_dim), dtype=jnp.float32)

    loss = cluster_loss_pallas(x, cluster_num_list)
    loss = jax.block_until_ready(loss)

    ref = jax.block_until_ready(_reference_jax(x, cluster_num_list))
    err = abs(float(loss) - float(ref))
    assert err < 3e-3 * max(1.0, abs(float(ref))), (float(loss), float(ref), err)

    print("KERNEL_OK")
</pallas_src>

<mosaic_0001>
module attributes {stable_mosaic.version = 11 : i64} {
  func.func @_cluster_loss_kernel(%arg0: i32, %arg1: i32, %arg2: memref<16x128xf32, #tpu.memory_space<vmem>>, %arg3: memref<8x16xf32, #tpu.memory_space<vmem>>, %arg4: memref<1x1xf32, #tpu.memory_space<vmem>>, %arg5: memref<8x128xf32, #tpu.memory_space<vmem>>, %arg6: memref<8x1xf32, #tpu.memory_space<vmem>>, %arg7: memref<1x1xf32, #tpu.memory_space<vmem>>) attributes {dimension_semantics = [#tpu.dimension_semantics<arbitrary>, #tpu.dimension_semantics<arbitrary>], iteration_bounds = array<i64: 2, 1>, scalar_prefetch = 0 : i64, scratch_operands = 3 : i64, tpu.core_type = #tpu.core_type<tc>, window_params = [{transform_indices = @transform_0, window_bounds = array<i64: 16, 128>}, {transform_indices = @transform_1, window_bounds = array<i64: 8, 16>}, {pipeline_mode = #tpu.pipeline_mode<synchronous>, transform_indices = @transform_2, window_bounds = array<i64: 1, 1>}]} {
    %c0_i32 = arith.constant 0 : i32
    %0 = arith.cmpi eq, %arg0, %c0_i32 : i32
    %c0_i32_0 = arith.constant 0 : i32
    %1 = arith.cmpi eq, %arg1, %c0_i32_0 : i32
    %2 = arith.andi %0, %1 : i1
    %3 = arith.extui %2 : i1 to i32
    %c0_i32_1 = arith.constant 0 : i32
    %4 = arith.cmpi ne, %3, %c0_i32_1 : i32
    scf.if %4 {
      %cst = arith.constant 0.000000e+00 : f32
      %23 = vector.broadcast %cst : f32 to vector<8x128xf32>
      %c0_14 = arith.constant 0 : index
      %c0_15 = arith.constant 0 : index
      %24 = vector.load %arg5[%c0_14, %c0_15] : memref<8x128xf32, #tpu.memory_space<vmem>>, vector<8x128xf32>
      tpu.vector_store %arg5[%c0_14, %c0_15], %23 {strides = array<i32>} : memref<8x128xf32, #tpu.memory_space<vmem>>, vector<8x128xf32>,
      %cst_16 = arith.constant 0.000000e+00 : f32
      %25 = vector.broadcast %cst_16 : f32 to vector<8x1xf32>
      %c0_17 = arith.constant 0 : index
      %c0_18 = arith.constant 0 : index
      %26 = vector.load %arg6[%c0_17, %c0_18] : memref<8x1xf32, #tpu.memory_space<vmem>>, vector<8x1xf32>
      tpu.vector_store %arg6[%c0_17, %c0_18], %25 {strides = array<i32>} : memref<8x1xf32, #tpu.memory_space<vmem>>, vector<8x1xf32>,
      %cst_19 = arith.constant 0.000000e+00 : f32
      %27 = vector.broadcast %cst_19 : f32 to vector<1x1xf32>
      %c0_20 = arith.constant 0 : index
      %c0_21 = arith.constant 0 : index
      %28 = vector.load %arg7[%c0_20, %c0_21] : memref<1x1xf32, #tpu.memory_space<vmem>>, vector<1x1xf32>
      tpu.vector_store %arg7[%c0_20, %c0_21], %27 {strides = array<i32>} : memref<1x1xf32, #tpu.memory_space<vmem>>, vector<1x1xf32>,
    } else {
    }
    %c0 = arith.constant 0 : index
    %c0_2 = arith.constant 0 : index
    %5 = vector.load %arg2[%c0, %c0_2] : memref<16x128xf32, #tpu.memory_space<vmem>>, vector<16x128xf32>
    %c0_3 = arith.constant 0 : index
    %c0_4 = arith.constant 0 : index
    %6 = vector.load %arg3[%c0_3, %c0_4] : memref<8x16xf32, #tpu.memory_space<vmem>>, vector<8x16xf32>
    %c0_i32_5 = arith.constant 0 : i32
    %7 = arith.cmpi eq, %arg0, %c0_i32_5 : i32
    %8 = arith.extui %7 : i1 to i32
    %c0_i32_6 = arith.constant 0 : i32
    %9 = arith.cmpi ne, %8, %c0_i32_6 : i32
    scf.if %9 {
      %c0_14 = arith.constant 0 : index
      %c0_15 = arith.constant 0 : index
      %23 = vector.load %arg5[%c0_14, %c0_15] : memref<8x128xf32, #tpu.memory_space<vmem>>, vector<8x128xf32>
      %cst = arith.constant dense<0.000000e+00> : vector<8x128xf32>
      %24 = tpu.matmul %6, %5, %cst {dimension_numbers = #tpu.dot_dimension_numbers<[1], [0], [0], [1], [0, 0, 1, 1], [], []>, precision = #tpu.contract_precision<fp32>} : vector<8x16xf32>, vector<16x128xf32>, vector<8x128xf32> -> vector<8x128xf32>
      %25 = arith.addf %23, %24 : vector<8x128xf32>
      %c0_16 = arith.constant 0 : index
      %c0_17 = arith.constant 0 : index
      %26 = vector.load %arg5[%c0_16, %c0_17] : memref<8x128xf32, #tpu.memory_space<vmem>>, vector<8x128xf32>
      tpu.vector_store %arg5[%c0_16, %c0_17], %25 {strides = array<i32>} : memref<8x128xf32, #tpu.memory_space<vmem>>, vector<8x128xf32>,
      %c0_18 = arith.constant 0 : index
      %c0_19 = arith.constant 0 : index
      %27 = vector.load %arg6[%c0_18, %c0_19] : memref<8x1xf32, #tpu.memory_space<vmem>>, vector<8x1xf32>
      %cst_20 = arith.constant dense<0.000000e+00> : vector<8xf32>
      %28 = vector.multi_reduction <add>, %6, %cst_20 [1] : vector<8x16xf32> to vector<8xf32>
      %29 = vector.shape_cast %28 : vector<8xf32> to vector<8x1xf32>
      %30 = arith.addf %27, %29 : vector<8x1xf32>
      %c0_21 = arith.constant 0 : index
      %c0_22 = arith.constant 0 : index
      %31 = vector.load %arg6[%c0_21, %c0_22] : memref<8x1xf32, #tpu.memory_space<vmem>>, vector<8x1xf32>
      tpu.vector_store %arg6[%c0_21, %c0_22], %30 {strides = array<i32>} : memref<8x1xf32, #tpu.memory_space<vmem>>, vector<8x1xf32>,
    } else {
    }
    %c1_i32 = arith.constant 1 : i32
    %10 = arith.cmpi eq, %arg0, %c1_i32 : i32
    %c0_i32_7 = arith.constant 0 : i32
    %11 = arith.cmpi eq, %arg1, %c0_i32_7 : i32
    %12 = arith.andi %10, %11 : i1
    %13 = arith.extui %12 : i1 to i32
    %c0_i32_8 = arith.constant 0 : i32
    %14 = arith.cmpi ne, %13, %c0_i32_8 : i32
    scf.if %14 {
      %c0_14 = arith.constant 0 : index
      %c0_15 = arith.constant 0 : index
      %23 = vector.load %arg5[%c0_14, %c0_15] : memref<8x128xf32, #tpu.memory_space<vmem>>, vector<8x128xf32>
      %c0_16 = arith.constant 0 : index
      %c0_17 = arith.constant 0 : index
      %24 = vector.load %arg6[%c0_16, %c0_17] : memref<8x1xf32, #tpu.memory_space<vmem>>, vector<8x1xf32>
      %25 = vector.broadcast %24 : vector<8x1xf32> to vector<8x128xf32>
      %26 = arith.divf %23, %25 : vector<8x128xf32>
      %c0_18 = arith.constant 0 : index
      %c0_19 = arith.constant 0 : index
      %27 = vector.load %arg5[%c0_18, %c0_19] : memref<8x128xf32, #tpu.memory_space<vmem>>, vector<8x128xf32>
      tpu.vector_store %arg5[%c0_18, %c0_19], %26 {strides = array<i32>} : memref<8x128xf32, #tpu.memory_space<vmem>>, vector<8x128xf32>,
    } else {
    }
    %c1_i32_9 = arith.constant 1 : i32
    %15 = arith.cmpi eq, %arg0, %c1_i32_9 : i32
    %16 = arith.extui %15 : i1 to i32
    %c0_i32_10 = arith.constant 0 : i32
    %17 = arith.cmpi ne, %16, %c0_i32_10 : i32
    scf.if %17 {
      %c0_14 = arith.constant 0 : index
      %c0_15 = arith.constant 0 : index
      %23 = vector.load %arg5[%c0_14, %c0_15] : memref<8x128xf32, #tpu.memory_space<vmem>>, vector<8x128xf32>
      %cst = arith.constant dense<0.000000e+00> : vector<16x128xf32>
      %24 = tpu.matmul %6, %23, %cst {dimension_numbers = #tpu.dot_dimension_numbers<[0], [0], [1], [1], [0, 1, 1, 1], [], []>, precision = #tpu.contract_precision<fp32>} : vector<8x16xf32>, vector<8x128xf32>, vector<16x128xf32> -> vector<16x128xf32>
      %25 = arith.subf %5, %24 : vector<16x128xf32>
      %26 = arith.mulf %25, %25 : vector<16x128xf32>
      %cst_16 = arith.constant dense<0.000000e+00> : vector<16xf32>
      %27 = vector.multi_reduction <add>, %26, %cst_16 [1] : vector<16x128xf32> to vector<16xf32>
      %28 = vector.shape_cast %27 : vector<16xf32> to vector<16x1xf32>
      %c0_17 = arith.constant 0 : index
      %c0_18 = arith.constant 0 : index
      %29 = vector.load %arg7[%c0_17, %c0_18] : memref<1x1xf32, #tpu.memory_space<vmem>>, vector<1x1xf32>
      %30 = math.sqrt %28 : vector<16x1xf32>
      %31 = vector.shape_cast %30 : vector<16x1xf32> to vector<1x16x1xf32>
      %cst_19 = arith.constant dense<0.000000e+00> : vector<1xf32>
      %32 = vector.multi_reduction <add>, %31, %cst_19 [1, 2] : vector<1x16x1xf32> to vector<1xf32>
      %33 = vector.shape_cast %32 : vector<1xf32> to vector<1x1x1xf32>
      %34 = vector.extract %33[0, 0, 0] : f32 from vector<1x1x1xf32>
      %35 = vector.broadcast %34 : f32 to vector<1x1xf32>
      %36 = arith.addf %29, %35 : vector<1x1xf32>
      %c0_20 = arith.constant 0 : index
      %c0_21 = arith.constant 0 : index
      %37 = vector.load %arg7[%c0_20, %c0_21] : memref<1x1xf32, #tpu.memory_space<vmem>>, vector<1x1xf32>
      tpu.vector_store %arg7[%c0_20, %c0_21], %36 {strides = array<i32>} : memref<1x1xf32, #tpu.memory_space<vmem>>, vector<1x1xf32>,
    } else {
    }
    %c1_i32_11 = arith.constant 1 : i32
    %18 = arith.cmpi eq, %arg0, %c1_i32_11 : i32
    %c0_i32_12 = arith.constant 0 : i32
    %19 = arith.cmpi eq, %arg1, %c0_i32_12 : i32
    %20 = arith.andi %18, %19 : i1
    %21 = arith.extui %20 : i1 to i32
    %c0_i32_13 = arith.constant 0 : i32
    %22 = arith.cmpi ne, %21, %c0_i32_13 : i32
    scf.if %22 {
      %c0_14 = arith.constant 0 : index
      %c0_15 = arith.constant 0 : index
      %23 = vector.load %arg5[%c0_14, %c0_15] : memref<8x128xf32, #tpu.memory_space<vmem>>, vector<8x128xf32>
      %cst = arith.constant dense<0.000000e+00> : vector<8x8xf32>
      %24 = tpu.matmul %23, %23, %cst {dimension_numbers = #tpu.dot_dimension_numbers<[1], [1], [0], [0], [0, 0, 1, 0], [], []>, precision = #tpu.contract_precision<fp32>} : vector<8x128xf32>, vector<8x128xf32>, vector<8x8xf32> -> vector<8x8xf32>
      %25 = tpu.iota {dimensions = array<i32: 0>} : vector<8x8xi32>
      %26 = tpu.iota {dimensions = array<i32: 1>} : vector<8x8xi32>
      %27 = arith.cmpi eq, %25, %26 : vector<8x8xi32>
      %cst_16 = arith.constant 0.000000e+00 : f32
      %28 = vector.broadcast %cst_16 : f32 to vector<8x8xf32>
      %29 = arith.select %27, %24, %28 : vector<8x8xi1>, vector<8x8xf32>
      %cst_17 = arith.constant dense<0.000000e+00> : vector<8xf32>
      %30 = vector.multi_reduction <add>, %29, %cst_17 [1] : vector<8x8xf32> to vector<8xf32>
      %31 = vector.shape_cast %30 : vector<8xf32> to vector<8x1xf32>
      %cst_18 = arith.constant dense<0.000000e+00> : vector<8xf32>
      %32 = vector.multi_reduction <add>, %29, %cst_18 [0] : vector<8x8xf32> to vector<8xf32>
      %33 = vector.shape_cast %32 : vector<8xf32> to vector<1x8xf32>
      %34 = vector.broadcast %31 : vector<8x1xf32> to vector<8x8xf32>
      %35 = vector.broadcast %33 : vector<1x8xf32> to vector<8x8xf32>
      %36 = arith.addf %34, %35 : vector<8x8xf32>
      %cst_19 = arith.constant 2.000000e+00 : f32
      %37 = vector.broadcast %cst_19 : f32 to vector<8x8xf32>
      %38 = arith.mulf %37, %24 : vector<8x8xf32>
      %39 = arith.subf %36, %38 : vector<8x8xf32>
      %cst_20 = arith.constant 9.99999996E-13 : f32
      %40 = vector.broadcast %cst_20 : f32 to vector<8x8xf32>
      %41 = arith.maximumf %39, %40 : vector<8x8xf32>
      %42 = math.sqrt %41 : vector<8x8xf32>
      %cst_21 = arith.constant 1.000000e+00 : f32
      %43 = vector.broadcast %cst_21 : f32 to vector<8x8xf32>
      %44 = arith.minimumf %42, %43 : vector<8x8xf32>
      %cst_22 = arith.constant 0.000000e+00 : f32
      %cst_23 = arith.constant 1.000000e+00 : f32
      %45 = vector.broadcast %cst_22 : f32 to vector<8x8xf32>
      %46 = vector.broadcast %cst_23 : f32 to vector<8x8xf32>
      %47 = arith.select %27, %45, %46 : vector<8x8xi1>, vector<8x8xf32>
      %48 = arith.subf %44, %47 : vector<8x8xf32>
      %49 = arith.mulf %48, %48 : vector<8x8xf32>
      %cst_24 = arith.constant dense<0.000000e+00> : vector<8xf32>
      %50 = vector.multi_reduction <add>, %49, %cst_24 [1] : vector<8x8xf32> to vector<8xf32>
      %51 = vector.shape_cast %50 : vector<8xf32> to vector<8x1xf32>
      %52 = math.sqrt %51 : vector<8x1xf32>
      %53 = vector.shape_cast %52 : vector<8x1xf32> to vector<1x8x1xf32>
      %cst_25 = arith.constant dense<0.000000e+00> : vector<1xf32>
      %54 = vector.multi_reduction <add>, %53, %cst_25 [1, 2] : vector<1x8x1xf32> to vector<1xf32>
      %55 = vector.shape_cast %54 : vector<1xf32> to vector<1x1x1xf32>
      %56 = vector.extract %55[0, 0, 0] : f32 from vector<1x1x1xf32>
      %57 = vector.broadcast %56 : f32 to vector<1x1xf32>
      %cst_26 = arith.constant 8.000000e+00 : f32
      %58 = vector.broadcast %cst_26 : f32 to vector<1x1xf32>
      %59 = arith.divf %57, %58 : vector<1x1xf32>
      %c0_27 = arith.constant 0 : index
      %c0_28 = arith.constant 0 : index
      %60 = vector.load %arg7[%c0_27, %c0_28] : memref<1x1xf32, #tpu.memory_space<vmem>>, vector<1x1xf32>
      %cst_29 = arith.constant 1.300000e+01 : f32
      %61 = vector.broadcast %cst_29 : f32 to vector<1x1xf32>
      %62 = arith.divf %60, %61 : vector<1x1xf32>
      %63 = arith.addf %62, %59 : vector<1x1xf32>
      %c0_30 = arith.constant 0 : index
      %c0_31 = arith.constant 0 : index
      %64 = vector.load %arg4[%c0_30, %c0_31] : memref<1x1xf32, #tpu.memory_space<vmem>>, vector<1x1xf32>
      tpu.vector_store %arg4[%c0_30, %c0_31], %63 {strides = array<i32>} : memref<1x1xf32, #tpu.memory_space<vmem>>, vector<1x1xf32>,
    } else {
    }
    return
  }
  func.func @transform_0(%arg0: i32, %arg1: i32) -> (i32, i32) {
    %c0_i32 = arith.constant 0 : i32
    %c0_i32_0 = arith.constant 0 : i32
    return %arg1, %c0_i32 : i32, i32
  }
  func.func @transform_1(%arg0: i32, %arg1: i32) -> (i32, i32) {
    %c0_i32 = arith.constant 0 : i32
    %c0_i32_0 = arith.constant 0 : i32
    return %c0_i32, %arg1 : i32, i32
  }
  func.func @transform_2(%arg0: i32, %arg1: i32) -> (i32, i32) {
    %c0_i32 = arith.constant 0 : i32
    %c0_i32_0 = arith.constant 0 : i32
    %c0_i32_1 = arith.constant 0 : i32
    return %c0_i32, %c0_i32_0 : i32, i32
  }
}

</mosaic_0001>

<bundles_post_ra>
// kernel: tpu_custom_call.1
= control target key start
LH: loop header
LB: loop body
LE: loop exit
PB: predicated region body
PF: predicated region fallthrough
CT: control target
= control target key end

     0   :  { %7 = vsyncpa [#allocation6], 0  ;;  %s1300_s0 = inlined_call_operand.hbm [shape: f32[16,128], index: 0, kind: input, shape index: {}]   ;;  %s1301_s1 = inlined_call_operand.hbm [shape: f32[8,16], index: 1, kind: input, shape index: {}]   ;;  %s1302_s2 = inlined_call_operand.hbm [shape: f32[1,1], index: 2, kind: output, shape index: {}]  }
   0x1   :  { %8 = vsyncpa [#allocation9], 0 }
   0x2   :  { %9 = vsyncpa [#allocation7], 0  ;;  %s1208_s9 = smov 0   ;;  %s1210_s10 = smov 0  }
   0x3   :  { %s1212_s11 = smov 0  }
   0x4 LB: > { %s961_s12 = sadd.s32 4294967295, %s1181_s11   ;;  %s27_s13 = sadd.s32 1, %s1177_s10  ;;  %s1181_s11 = sphi %s1212_s11, %s15_s11   ;;  %s1177_s10 = sphi %s1210_s10, %s1306_s10   ;;  %s1173_s9 = sphi %s1208_s9, %s1305_s9  }
   0x5   : > { %p29_p0 = scmp.ge.s32.totalorder %s27_s13, 2  ;;  %p962_p1 = scmp.ge.s32.totalorder %s1181_s11, 1 }
   0x6   : > { %p105_p2 = scmp.lt.s32.totalorder %s1181_s11, 3  ;;  %p1235_p4 = scmp.eq.s32.totalorder %s961_s12, 0 }
   0x7   : > { %s1308_s13 = smov (%p29_p0, %s27_s13), 0  ;;  %s119_s18 = sshll.u32 %s1300_s0, 4  ;;  %s120_s18 = int_to_ptr.hbm [resolvable:$true] %s119_s18 }
   0x8   : > { %p1229_p3 = pnand %p962_p1, %p105_p2  ;;  %s1183_s19 = smov [#allocation5]  }
   0x9   : > { %s121_s20 = sshll.u32 %s1183_s19, 4  ;;  %s136_s23 = sshll.u32 %s1301_s1, 4  ;;  %s122_s20 = int_to_ptr.vmem [resolvable:$true] %s121_s20  ;;  %s137_s23 = int_to_ptr.hbm [resolvable:$true] %s136_s23 }
   0xa   : > { %p996_p5 = pneg %p1229_p3  ;;  %s1184_s24 = smov 128  }
   0xb   : > { %s1185_s25 = smov 8   ;;  %s1186_s26 = smov [#allocation8]  }
   0xc   : > { %p997_p6 = pnand %p1235_p4, %p996_p5  ;;  %s138_s27 = sshll.u32 %s1186_s26, 4  ;;  %s139_s27 = int_to_ptr.vmem [resolvable:$true] %s138_s27 }
   0xd   : > { %151 = sbr.rel (%p1229_p3) target bundleno = 1629 (0x65d), region = 28 }
   0xe   : > { %999 = dma.hbm_to_vmem [thread:$0]  (!%p997_p6), %s120_s18, 256, %s122_s20, [#allocation6], %s1184_s24, %s1184_s24, %s1185_s25  }
   0xf   : > { %1002 = dma.hbm_to_vmem [thread:$0]  (!%p997_p6), %s137_s23, 128, %s139_s27, [#allocation9]  }
  0x12   : > { %1160 = dma.done.wait (%p1235_p4), [#allocation6], 256  }
  0x13   : > { %1162 = vsyncadd (%p1235_p4), [#allocation6], 4294967040 }
  0x14   : > { %1164 = dma.done.wait (%p1235_p4), [#allocation9], 128  }
  0x15   : > { %1166 = vsyncadd (%p1235_p4), [#allocation9], 4294967168  ;;  %p170_p7 = scmp.eq.s32.totalorder %s1173_s9, 0 }
  0x16   : > { %vm177_vm0 = vcmask (%p170_p7), 7168   ;;  %vm179_vm1 = vcmask (%p170_p7), 0   ;;  %v1187_v0 = vmov (%p170_p7), 0.0  }
  0x17   : > { %175 = sbr.rel (!%p170_p7) target bundleno = 28 (0x1c), region = 40  ;;  %176 = vst [vmem:[#allocation2] sm:$0xff] (%p170_p7), %v1187_v0 }
  0x18   : > { %178 = vst.msk [vmem:[#allocation3] sm:$0xff] (%p170_p7), %vm177_vm0, %v1187_v0 }
  0x19   : > { %180 = vst.msk [vmem:[#allocation4] sm:$0x1] (%p170_p7), %vm179_vm1, %v1187_v0 }
  0x1c PF: > { %v1260_v1 = vld [vmem:[#allocation5] sm:$0xff]  ;;  %v1262_v2 = vld [vmem:[#allocation5 + $0x8] sm:$0xff]  ;;  %v1264_v3 = vld [vmem:[#allocation8] sm:$0xff]  ;;  %p969_p8 = scmp.ne.s32.totalorder %s1173_s9, 0 }
  0x1e   : > { %186 = sbr.rel (%p969_p8) target bundleno = 188 (0xbc), region = 44 }
  0x23   : > { %v206_v4 = vand.u32 4294901760, %v1262_v2  ;;  %v208_v5 = vand.u32 4294901760, %v1260_v1  ;;  %vm188_vm2 = vcmask 130048   ;;  %v353_v21 = vld [vmem:[#allocation3] sm:$0xff]  ;;  %vm358_vm3 = vcmask 7168   ;;  %v187_v34 = vld [vmem:[#allocation2] sm:$0xff] }
  0x24   : > { %v190_v6 = vsel %vm188_vm2, %v1264_v3, 0  ;;  %v354_v7 = vsel %vm188_vm2, %v1264_v3, 0.0 }
  0x25   : > { %v234_v8 = vsub.f32 %v1262_v2, %v206_v4  ;;  %v240_v9 = vsub.f32 %v1260_v1, %v208_v5  ;;  %291 = vmatpush.msra.mxu3 %v206_v4  ;;  %207 = vmatpush.msra.mxu0 %v206_v4  ;;  %v210_v10 = vand.u32 4294901760, %v190_v6 }
  0x26   : > { %355 = vadd.xlane.f32.xlu0 %v354_v7 }
  0x27   : > { %266 = vmatpush.msra.mxu2 %v234_v8  ;;  %v211_v11 = vsub.f32 %v190_v6, %v210_v10  ;;  %v235_v12 = vand.u32 4294901760, %v234_v8  ;;  %293 = vmatpush.msra.mxu3 %v208_v5  ;;  %v241_v13 = vand.u32 4294901760, %v240_v9 }
  0x28   : > { %209 = vmatpush.msra.mxu0 %v208_v5 }
  0x29   : > { %269 = vmatpush.msra.mxu2 %v240_v9  ;;  %v236_v14 = vsub.f32 %v234_v8, %v235_v12  ;;  %v212_v15 = vand.u32 4294901760, %v211_v11  ;;  %v242_v16 = vsub.f32 %v240_v9, %v241_v13 }
  0x2a   : > { %318 = vmatpush.msrb.mxu0 %v235_v12  ;;  %272 = vmatmul.f32.vlgmr.msra.gmra.mxu2 %v211_v11 }
  0x2b   : > { %v237_v17 = vand.u32 4294901760, %v236_v14  ;;  %297 = vmatmul.f32.vlgmr.msra.gmra.mxu3 %v212_v15  ;;  %v213_v18 = vsub.f32 %v211_v11, %v212_v15  ;;  %v243_v19 = vand.u32 4294901760, %v242_v16 }
  0x2c   : > { %322 = vmatpush.msrb.mxu0 %v241_v13 }
  0x2d   : > { %238 = vmatpush.msra.mxu1 %v237_v17  ;;  %v214_v20 = vand.u32 4294901760, %v213_v18 }
  0x2f   : > { %215 = vmatmul.f32.vlgmr.msra.gmra.mxu0 %v214_v20  ;;  %244 = vmatpush.msra.mxu1 %v243_v19 }
  0x30   : > { %246 = vmatmul.f32.vlgmr.msra.gmra.mxu1 %v210_v10 }
  0x31   : > { %343 = vmatpush.msrb.mxu1 %v206_v4 }
  0x33   : > { %345 = vmatpush.msrb.mxu1 %v208_v5 }
  0x37   : > { %324 = vmatmul.f32.vlgmr.msrb.gmra.mxu0 %v210_v10 }
  0x38   : > { %347 = vmatmul.f32.vlgmr.msrb.gmra.mxu1 %v210_v10 }
  0x99   : > { %v356_v22 = vpop.xlane.xlu0 %355 }
  0x9a   : > { %v357_v23 = vadd.f32 %v356_v22, %v353_v21 }
  0x9c   : > { %359 = vst.msk [vmem:[#allocation3] sm:$0xff] %vm358_vm3, %v357_v23 }
  0xac   : > { %v216_v24 = vpop.f32.mrf.mxu0 }
  0xad   : > { %v247_v25 = vpop.f32.mrf.mxu1  ;;  %v273_v26 = vpop.f32.mrf.mxu2 }
  0xae   : > { %v248_v27 = vadd.f32 %v247_v25, %v216_v24  ;;  %v298_v28 = vpop.f32.mrf.mxu3 }
  0xb0   : > { %v274_v29 = vadd.f32 %v273_v26, %v248_v27 }
  0xb2   : > { %v299_v30 = vadd.f32 %v298_v28, %v274_v29 }
  0xb4   : > { %v325_v31 = vpop.f32.mrf.mxu0 }
  0xb5   : > { %v326_v32 = vadd.f32 %v325_v31, %v299_v30  ;;  %v348_v33 = vpop.f32.mrf.mxu1 }
  0xb7   : > { %v349_v35 = vadd.f32 %v348_v33, %v326_v32 }
  0xb9   : > { %v351_v36 = vadd.f32 %v349_v35, %v187_v34 }
  0xbb   : > { %352 = vst [vmem:[#allocation2] sm:$0xff] %v351_v36 }
  0xbc PF: > { %p360_p9 = scmp.eq.s32.totalorder %s1173_s9, 1 }
  0xbd   : > { %v366_v37 = vld [vmem:[#allocation3] sm:$0xff] (%p360_p9)  ;;  %v1188_v38 = vmov (%p360_p9), 0  }
  0xbe   : > { %364 = sbr.rel (!%p360_p9) target bundleno = 326 (0x146), region = 48  ;;  %1044 = vset.pattern.permute.xlu0 (%p360_p9), %v1188_v38 }
  0xbf   : > { %369 = vperm.xlu0 (%p360_p9), %1044, %v366_v37  }
  0xc2   : > { %v365_v47 = vld [vmem:[#allocation2] sm:$0xff] (%p360_p9) }
 0x131   : > { %v370_v39 = vpop.permute.xlu0 %369 }
 0x132   : > { %1045 = vrcp.f32 %v370_v39  ;;  %v383_v43 = vand.u32 2147483648, %v370_v39  ;;  %v381_v45 = vand.u32 2147483647, %v370_v39  ;;  %vm377_vm5 = vweird.f32 %v370_v39 }
 0x134   : > { %v384_v48 = vor.u32 1.1754944e-38, %v383_v43  ;;  %vm382_vm7 = vcmp.eq.f32.partialorder %v381_v45, 8.507059e+37 }
 0x138   : > { %v1046_v40 = vpop.eup %1045 }
 0x139   : > { %v373_v41 = vmul.f32 %v1046_v40, %v370_v39  ;;  %vm378_vm4 = vweird.f32 %v1046_v40 }
 0x13a   : > { %vm379_vm6 = vmor %vm377_vm5, %vm378_vm4 }
 0x13b   : > { %v374_v42 = vsub.f32 1.0, %v373_v41 }
 0x13d   : > { %v375_v44 = vmul.f32 %v1046_v40, %v374_v42 }
 0x13f   : > { %v376_v46 = vadd.f32 %v1046_v40, %v375_v44 }
 0x141   : > { %v380_v49 = vsel %vm379_vm6, %v1046_v40, %v376_v46 }
 0x142   : > { %v385_v50 = vsel %vm382_vm7, %v384_v48, %v380_v49 }
 0x143   : > { %v386_v51 = vmul.f32 %v385_v50, %v365_v47 }
 0x145   : > { %387 = vst [vmem:[#allocation2] sm:$0xff] %v386_v51 }
 0x146 PF: > { %p971_p10 = scmp.ne.s32.totalorder %s1173_s9, 1 }
 0x148   : > { %390 = sbr.rel (%p971_p10) target bundleno = 999 (0x3e7), region = 52 }
 0x14d   : > { %392 = vxpose.xlu0.b32.start.end [1/1] (short) (narrow) %v1264_v3, 16  ;;  %v391_v52 = vld [vmem:[#allocation2] sm:$0xff]  ;;  %vm424_vm8 = vcmask 64512   ;;  %vm641_vm12 = vcmask 7168   ;;  %vm656_vm14 = vcmask 0  }
 0x14e   : > { %v446_v53 = vand.u32 4294901760, %v391_v52 }
 0x150   : > { %v481_v54 = vsub.f32 %v391_v52, %v446_v53  ;;  %447 = vmatpush.msra.mxu0 %v446_v53  ;;  %978 = vmatpush.msra.mxu2 %v446_v53 }
 0x152   : > { %v482_v55 = vand.u32 4294901760, %v481_v54  ;;  %512 = vmatpush.msrb.mxu2 %v481_v54 }
 0x154   : > { %v483_v56 = vsub.f32 %v481_v54, %v482_v55  ;;  %572 = vmatpush.msrb.mxu0 %v482_v55 }
 0x156   : > { %v484_v57 = vand.u32 4294901760, %v483_v56 }
 0x158   : > { %485 = vmatpush.msra.mxu1 %v484_v57  ;;  %979 = vmatpush.msra.mxu3 %v484_v57 }
 0x15a   : > { %598 = vmatpush.msrb.mxu1 %v446_v53  ;;  %540 = vmatpush.msrb.mxu3 %v446_v53 }
 0x1f1   : > { %v408_v58 = vpop.trf.xlu0 }
 0x1f2   : > { %v426_v59 = vsel %vm424_vm8, %v408_v58, 0 }
 0x1f3   : > { %v448_v60 = vand.u32 4294901760, %v426_v59 }
 0x1f5   : > { %v449_v61 = vsub.f32 %v426_v59, %v448_v60  ;;  %487 = vmatmul.f32.vlgmr.msra.gmra.mxu1 %v448_v60 }
 0x1f7   : > { %v450_v62 = vand.u32 4294901760, %v449_v61 }
 0x1f9   : > { %v409_v63 = vpop.trf.xlu0  ;;  %v451_v0 = vsub.f32 %v449_v61, %v450_v62 }
 0x1fa   : > { %v429_v3 = vsel %vm424_vm8, %v409_v63, 0 }
 0x1fb   : > { %v456_v4 = vand.u32 4294901760, %v429_v3  ;;  %v452_v5 = vand.u32 4294901760, %v451_v0 }
 0x1fd   : > { %v457_v6 = vsub.f32 %v429_v3, %v456_v4  ;;  %453 = vmatmul.f32.vlgmr.msra.gmra.mxu0 %v452_v5  ;;  %491 = vmatmul.f32.vlgmr.msra.gmra.mxu3 %v456_v4 }
 0x1fe   : > { %600 = vmatmul.f32.vlgmr.msrb.gmra.mxu1 %v448_v60 }
 0x1ff   : > { %v458_v7 = vand.u32 4294901760, %v457_v6 }
 0x201   : > { %v459_v8 = vsub.f32 %v457_v6, %v458_v7 }
 0x203   : > { %v460_v9 = vand.u32 4294901760, %v459_v8 }
 0x205   : > { %461 = vmatmul.f32.vlgmr.msra.gmra.mxu2 %v460_v9  ;;  %544 = vmatmul.f32.vlgmr.msrb.gmra.mxu3 %v450_v62 }
 0x206   : > { %574 = vmatmul.f32.vlgmr.msrb.gmra.mxu0 %v448_v60  ;;  %604 = vmatmul.f32.gmra.mxu1 %v456_v4 }
 0x20d   : > { %515 = vmatmul.f32.vlgmr.msrb.gmra.mxu2 %v449_v61  ;;  %550 = vmatmul.f32.gmra.mxu3 %v458_v7 }
 0x20e   : > { %578 = vmatmul.f32.gmra.mxu0 %v456_v4  ;;  %v616_v4 = vld [vmem:[#allocation4] sm:$0x1] }
 0x215   : > { %520 = vmatmul.f32.gmra.mxu2 %v457_v6 }
 0x272   : > { %v488_v13 = vpop.f32.mrf.mxu1 }
 0x27a   : > { %v454_v11 = vpop.f32.mrf.mxu0 }
 0x27b   : > { %v489_v14 = vadd.f32 %v488_v13, %v454_v11  ;;  %v601_v20 = vpop.f32.mrf.mxu1 }
 0x280   : > { %v492_v10 = vpop.f32.mrf.mxu3 }
 0x283   : > { %v575_v18 = vpop.f32.mrf.mxu0  ;;  %v605_v32 = vpop.f32.mrf.mxu1 }
 0x288   : > { %v462_v12 = vpop.f32.mrf.mxu2  ;;  %v545_v15 = vpop.f32.mrf.mxu3 }
 0x289   : > { %v493_v22 = vadd.f32 %v492_v10, %v462_v12 }
 0x28b   : > { %v579_v30 = vpop.f32.mrf.mxu0 }
 0x290   : > { %v516_v16 = vpop.f32.mrf.mxu2  ;;  %v551_v27 = vpop.f32.mrf.mxu3 }
 0x291   : > { %v517_v17 = vadd.f32 %v516_v16, %v489_v14 }
 0x293   : > { %v546_v19 = vadd.f32 %v545_v15, %v517_v17 }
 0x295   : > { %v576_v21 = vadd.f32 %v575_v18, %v546_v19 }
 0x297   : > { %v602_v23 = vadd.f32 %v601_v20, %v576_v21 }
 0x298   : > { %v521_v24 = vpop.f32.mrf.mxu2 }
 0x299   : > { %v522_v25 = vadd.f32 %v521_v24, %v493_v22  ;;  %v608_v26 = vsub.f32 %v1260_v1, %v602_v23 }
 0x29b   : > { %v552_v28 = vadd.f32 %v551_v27, %v522_v25  ;;  %v610_v29 = vmul.f32 %v608_v26, %v608_v26 }
 0x29d   : > { %612 = vadd.xlane.f32.xlu0 %v610_v29  ;;  %v580_v31 = vadd.f32 %v579_v30, %v552_v28 }
 0x29f   : > { %v606_v33 = vadd.f32 %v605_v32, %v580_v31 }
 0x2a1   : > { %v609_v34 = vsub.f32 %v1262_v2, %v606_v33 }
 0x2a3   : > { %v611_v35 = vmul.f32 %v609_v34, %v609_v34 }
 0x2a5   : > { %614 = vadd.xlane.f32.xlu1 %v611_v35 }
 0x310   : > { %v613_v36 = vpop.xlane.xlu0 %612 }
 0x311   : > { %1047 = vrsqrt.f32 %v613_v36  ;;  %vm624_vm9 = vcmp.eq.f32.partialorder %v613_v36, inf  ;;  %v627_v50 = vand.u32 2147483648, %v613_v36  ;;  %vm626_vm10 = vcmp.eq.f32.partialorder %v613_v36, 0.0 }
 0x317   : > { %v1048_v37 = vpop.eup %1047 }
 0x318   : > { %v618_v38 = vmul.f32 %v1048_v37, %v613_v36  ;;  %v615_v39 = vpop.xlane.xlu1 %614 }
 0x319   : > { %1049 = vrsqrt.f32 %v615_v39  ;;  %vm636_vm11 = vcmp.eq.f32.partialorder %v615_v39, inf  ;;  %v639_v53 = vand.u32 2147483648, %v615_v39  ;;  %vm638_vm13 = vcmp.eq.f32.partialorder %v615_v39, 0.0 }
 0x31a   : > { %v619_v40 = vmul.f32 %v1048_v37, %v618_v38 }
 0x31c   : > { %v620_v1 = vmul.f32 0.5, %v619_v40 }
 0x31e   : > { %v621_v41 = vsub.f32 1.5, %v620_v1 }
 0x31f   : > { %v1050_v42 = vpop.eup %1049 }
 0x320   : > { %v630_v43 = vmul.f32 %v1050_v42, %v615_v39  ;;  %v622_v44 = vmul.f32 %v1048_v37, %v621_v41 }
 0x322   : > { %v631_v45 = vmul.f32 %v1050_v42, %v630_v43  ;;  %v623_v46 = vmul.f32 %v622_v44, %v613_v36 }
 0x324   : > { %v632_v47 = vmul.f32 0.5, %v631_v45  ;;  %v625_v2 = vsel %vm624_vm9, %v613_v36, %v623_v46 }
 0x325   : > { %v628_v52 = vsel %vm626_vm10, %v627_v50, %v625_v2 }
 0x326   : > { %v633_v48 = vsub.f32 1.5, %v632_v47  ;;  %v642_v56 = vsel %vm641_vm12, %v628_v52, 0.0 }
 0x328   : > { %v634_v49 = vmul.f32 %v1050_v42, %v633_v48 }
 0x32a   : > { %v635_v51 = vmul.f32 %v634_v49, %v615_v39 }
 0x32c   : > { %v637_v54 = vsel %vm636_vm11, %v615_v39, %v635_v51 }
 0x32d   : > { %v640_v55 = vsel %vm638_vm13, %v639_v53, %v637_v54 }
 0x32e   : > { %v643_v57 = vsel %vm641_vm12, %v640_v55, 0.0 }
 0x32f   : > { %v644_v58 = vadd.f32 %v643_v57, %v642_v56 }
 0x331   : > { %645 = vadd.xlane.f32.xlu1 %v644_v58 }
 0x3a4   : > { %v646_v59 = vpop.xlane.xlu1 %645 }
 0x3a5   : > { %v647_v60 = vrot.slane %v646_v59, 4 }
 0x3a7   : > { %v648_v61 = vadd.f32 %v647_v60, %v646_v59 }
 0x3a9   : > { %v649_v62 = vrot.slane %v648_v61, 2 }
 0x3ab   : > { %v650_v63 = vadd.f32 %v649_v62, %v648_v61 }
 0x3ad   : > { %v651_v0 = vrot.slane %v650_v63, 1 }
 0x3af   : > { %v652_v3 = vadd.f32 %v651_v0, %v650_v63 }
 0x3b1   : > { %980 = vpush %v652_v3 }
 0x3e2   : > { %s981_s28 = spop %980 }
 0x3e3   : > { %v654_v5 = vstv %s981_s28 }
 0x3e4   : > { %v655_v6 = vadd.f32 %v654_v5, %v616_v4 }
 0x3e6   : > { %657 = vst.msk [vmem:[#allocation4] sm:$0x1] %vm656_vm14, %v655_v6 }
 0x3e7 PF: > { %659 = sbr.rel (!%p360_p9) target bundleno = 1623 (0x657), region = 56  ;;  %v660_v7 = vld [vmem:[#allocation2] sm:$0xff] (%p360_p9)  ;;  %v807_v16 = vlaneseq (%p360_p9)  ;;  %vm813_vm0 = vcmask (%p360_p9), 64512   ;;  %v1189_v2 = vmov (%p360_p9), 1.0   ;;  %vm858_vm4 = vcmask (%p360_p9), 7168  }
 0x3e8   : > { %v676_v8 = vand.u32 (%p360_p9), 4294901760, %v660_v7  ;;  %vm888_vm8 = vcmask (%p360_p9), 0  }
 0x3e9   : > { %v808_v20 = vshrl.u32 (%p360_p9), %v807_v16, 7  ;;  %v810_v21 = vand.u32 (%p360_p9), 127, %v807_v16 }
 0x3ea   : > { %v679_v9 = vsub.f32 (%p360_p9), %v660_v7, %v676_v8  ;;  %677 = vmatpush.xpose.msra.mxu0 (%p360_p9), %v676_v8  ;;  %753 = vmatpush.xpose.msra.mxu3 (%p360_p9), %v676_v8 }
 0x3eb   : > { %vm811_vm15 = vcmp.eq.s32.totalorder (%p360_p9), %v808_v20, %v810_v21 }
 0x3ec   : > { %730 = vmatpush.xpose.msra.mxu2 %v679_v9  ;;  %v680_v10 = vand.u32 4294901760, %v679_v9  ;;  %v840_v49 = vsel %vm811_vm15, 0.0, %v1189_v2 }
 0x3ee   : > { %v681_v11 = vsub.f32 %v679_v9, %v680_v10  ;;  %757 = vmatmul.f32.vlgmr.msra.gmra.mxu3 %v680_v10  ;;  %779 = vmatpush.xpose.msrb.mxu0 %v680_v10 }
 0x3ef   : > { %733 = vmatmul.f32.vlgmr.msra.gmra.mxu2 %v679_v9 }
 0x3f0   : > { %v682_v12 = vand.u32 4294901760, %v681_v11  ;;  %v1190_v11 = vmov 13.0  }
 0x3f2   : > { %707 = vmatpush.xpose.msra.mxu1 %v682_v12  ;;  %683 = vmatmul.f32.vlgmr.msra.gmra.mxu0 %v682_v12  ;;  %v1191_v12 = vmov 8.0  }
 0x3f5   : > { %709 = vmatmul.f32.vlgmr.msra.gmra.mxu1 %v676_v8 }
 0x3f6   : > { %801 = vmatpush.xpose.msrb.mxu1 %v676_v8 }
 0x3fa   : > { %781 = vmatmul.f32.vlgmr.msrb.gmra.mxu0 %v676_v8 }
 0x3fd   : > { %803 = vmatmul.f32.vlgmr.msrb.gmra.mxu1 %v676_v8 }
 0x46f   : > { %v684_v13 = vpop.f32.mrf.mxu0 }
 0x471   : > { %v758_v18 = vpop.f32.mrf.mxu3 }
 0x472   : > { %v710_v14 = vpop.f32.mrf.mxu1  ;;  %v734_v15 = vpop.f32.mrf.mxu2 }
 0x473   : > { %v711_v17 = vadd.f32 %v710_v14, %v684_v13 }
 0x475   : > { %v735_v19 = vadd.f32 %v734_v15, %v711_v17 }
 0x477   : > { %v759_v22 = vadd.f32 %v758_v18, %v735_v19  ;;  %v782_v23 = vpop.f32.mrf.mxu0 }
 0x479   : > { %v783_v24 = vadd.f32 %v782_v23, %v759_v22  ;;  %v878_v23 = vld [vmem:[#allocation4] sm:$0x1] }
 0x47a   : > { %v804_v25 = vpop.f32.mrf.mxu1 }
 0x47b   : > { %v805_v26 = vadd.f32 %v804_v25, %v783_v24 }
 0x47d   : > { %v812_v27 = vsel %vm811_vm15, %v805_v26, 0.0  ;;  %v824_v36 = vmul.f32 2.0, %v805_v26 }
 0x47e   : > { %v814_v28 = vsel %vm813_vm0, %v812_v27, 0.0 }
 0x47f   : > { %815 = vadd.xlane.f32.xlu0 %v814_v28  ;;  %v817_v29 = vrot.slane %v814_v28, 4 }
 0x481   : > { %v818_v30 = vadd.f32 %v817_v29, %v814_v28 }
 0x483   : > { %v819_v31 = vrot.slane %v818_v30, 2 }
 0x485   : > { %v820_v32 = vadd.f32 %v819_v31, %v818_v30 }
 0x487   : > { %v821_v33 = vrot.slane %v820_v32, 1 }
 0x489   : > { %v822_v34 = vadd.f32 %v821_v33, %v820_v32 }
 0x4f2   : > { %v816_v35 = vpop.xlane.xlu0 %815 }
 0x4f3   : > { %v823_v37 = vadd.f32 %v822_v34, %v816_v35 }
 0x4f5   : > { %v825_v38 = vsub.f32 %v823_v37, %v824_v36 }
 0x4f7   : > { %v826_v39 = vmax.f32 %v825_v38, 1e-12 }
 0x4f9   : > { %1051 = vrsqrt.f32 %v826_v39  ;;  %vm834_vm1 = vcmp.eq.f32.partialorder %v826_v39, inf  ;;  %v837_v46 = vand.u32 2147483648, %v826_v39  ;;  %vm836_vm2 = vcmp.eq.f32.partialorder %v826_v39, 0.0 }
 0x4ff   : > { %v1052_v40 = vpop.eup %1051 }
 0x500   : > { %v828_v1 = vmul.f32 %v1052_v40, %v826_v39 }
 0x502   : > { %v829_v41 = vmul.f32 %v1052_v40, %v828_v1 }
 0x504   : > { %v830_v42 = vmul.f32 0.5, %v829_v41 }
 0x506   : > { %v831_v43 = vsub.f32 1.5, %v830_v42 }
 0x508   : > { %v832_v44 = vmul.f32 %v1052_v40, %v831_v43 }
 0x50a   : > { %v833_v45 = vmul.f32 %v832_v44, %v826_v39 }
 0x50c   : > { %v835_v47 = vsel %vm834_vm1, %v826_v39, %v833_v45 }
 0x50d   : > { %v838_v48 = vsel %vm836_vm2, %v837_v46, %v835_v47 }
 0x50e   : > { %v839_v50 = vmin.f32 %v838_v48, 1.0 }
 0x510   : > { %v841_v51 = vsub.f32 %v839_v50, %v840_v49 }
 0x512   : > { %v842_v52 = vmul.f32 %v841_v51, %v841_v51 }
 0x514   : > { %v843_v53 = vsel %vm813_vm0, %v842_v52, 0.0 }
 0x515   : > { %844 = vadd.xlane.f32.xlu0 %v843_v53 }
 0x588   : > { %v845_v54 = vpop.xlane.xlu0 %844 }
 0x589   : > { %1053 = vrsqrt.f32 %v845_v54  ;;  %vm853_vm3 = vcmp.eq.f32.partialorder %v845_v54, inf  ;;  %v856_v62 = vand.u32 2147483648, %v845_v54  ;;  %vm855_vm5 = vcmp.eq.f32.partialorder %v845_v54, 0.0 }
 0x58a   : > { %1055 = vrcp.f32 %v1190_v11 }
 0x58b   : > { %1057 = vrcp.f32 %v1191_v12 }
 0x58f   : > { %v1054_v55 = vpop.eup %1053 }
 0x590   : > { %v847_v56 = vmul.f32 %v1054_v55, %v845_v54  ;;  %v1056_v13 = vpop.eup %1055 }
 0x591   : > { %v1058_v14 = vpop.eup %1057  ;;  %v880_v15 = vmul.f32 13.0, %v1056_v13  ;;  %vm884_vm6 = vweird.f32 %v1056_v13 }
 0x592   : > { %v848_v57 = vmul.f32 %v1054_v55, %v847_v56  ;;  %v871_v16 = vmul.f32 8.0, %v1058_v14  ;;  %vm875_vm7 = vweird.f32 %v1058_v14 }
 0x593   : > { %v881_v17 = vsub.f32 1.0, %v880_v15 }
 0x594   : > { %v849_v58 = vmul.f32 0.5, %v848_v57  ;;  %v872_v18 = vsub.f32 1.0, %v871_v16 }
 0x595   : > { %v882_v19 = vmul.f32 %v1056_v13, %v881_v17 }
 0x596   : > { %v850_v59 = vsub.f32 1.5, %v849_v58  ;;  %v873_v20 = vmul.f32 %v1058_v14, %v872_v18 }
 0x597   : > { %v883_v21 = vadd.f32 %v1056_v13, %v882_v19 }
 0x598   : > { %v851_v60 = vmul.f32 %v1054_v55, %v850_v59  ;;  %v874_v22 = vadd.f32 %v1058_v14, %v873_v20 }
 0x599   : > { %v885_v24 = vsel %vm884_vm6, %v1056_v13, %v883_v21 }
 0x59a   : > { %v852_v61 = vmul.f32 %v851_v60, %v845_v54  ;;  %v876_v25 = vsel %vm875_vm7, %v1058_v14, %v874_v22  ;;  %v886_v26 = vmul.f32 %v885_v24, %v878_v23 }
 0x59c   : > { %v854_v63 = vsel %vm853_vm3, %v845_v54, %v852_v61 }
 0x59d   : > { %v857_v0 = vsel %vm855_vm5, %v856_v62, %v854_v63 }
 0x59e   : > { %v859_v3 = vsel %vm858_vm4, %v857_v0, 0.0 }
 0x59f   : > { %860 = vadd.xlane.f32.xlu1 %v859_v3 }
 0x612   : > { %v861_v4 = vpop.xlane.xlu1 %860 }
 0x613   : > { %v862_v5 = vrot.slane %v861_v4, 4 }
 0x615   : > { %v863_v6 = vadd.f32 %v862_v5, %v861_v4 }
 0x617   : > { %v864_v7 = vrot.slane %v863_v6, 2 }
 0x619   : > { %v865_v8 = vadd.f32 %v864_v7, %v863_v6 }
 0x61b   : > { %v866_v9 = vrot.slane %v865_v8, 1 }
 0x61d   : > { %v867_v10 = vadd.f32 %v866_v9, %v865_v8 }
 0x61f   : > { %982 = vpush %v867_v10 }
 0x650   : > { %s983_s29 = spop %982 }
 0x651   : > { %v869_v27 = vstv %s983_s29 }
 0x652   : > { %v877_v28 = vmul.f32 %v876_v25, %v869_v27 }
 0x654   : > { %v887_v29 = vadd.f32 %v886_v26, %v877_v28 }
 0x656   : > { %889 = vst.msk [vmem:[#allocation10] sm:$0x1] %vm888_vm8, %v887_v29 }
 0x657 PF: > { %p1007_p11 = scmp.eq.s32.totalorder %s961_s12, 1  ;;  %s898_s4 = sshll.u32 %s1302_s2, 4  ;;  %s899_s4 = int_to_ptr.hbm [resolvable:$true] %s898_s4 }
 0x658   : > { %s1192_s5 = smov [#allocation10]  }
 0x659   : > { %s896_s6 = sshll.u32 %s1192_s5, 4  ;;  %s897_s6 = int_to_ptr.vmem [resolvable:$true] %s896_s6 }
 0x65a   : > { %993 = dma.vmem_to_hbm [thread:$0]  (%p1007_p11), %s897_s6, 16, %s899_s4, [#allocation7]  }
 0x65b   : > { %1168 = dma.done.wait (%p1007_p11), [#allocation7], 16  }
 0x65c   : > { %1170 = vsyncadd (%p1007_p11), [#allocation7], 4294967280 }
 0x65d PF: > { %s15_s11 = sadd.s32 1, %s1181_s11   ;;  %s1305_s9 = smov %s1177_s10 }
 0x65e   : > { %p12_p12 = scmp.ge.s32.totalorder %s15_s11, 4   ;;  %s1306_s10 = smov %s1308_s13 }
 0x660   :  { %14 = sbr.rel (!%p12_p12) target bundleno = 4 (0x4), region = 83 }
 0x665   :  { %912 = vsyncpa [#allocation6], 1 }
 0x666   :  { %914 = vsyncpa [#allocation6 + $0x1], 1 }
 0x667   :  { %915 = vsyncpa [#allocation9], 1 }
 0x668   :  { %916 = vsyncpa [#allocation7], 1 }
 0x669   :  { %918 = vsyncpa [#allocation7 + $0x1], 1 }

</bundles_post_ra>
